<compile_context>
chip_gen: v7x
topology: tpu7x:2x2x1
jax: 0.10.0
libtpu: 0.0.40
codegen_flags: <defaults>
</compile_context>

<pallas_src>
import jax
import jax.numpy as jnp
from jax.experimental import pallas as pl
from jax.experimental.pallas import tpu as pltpu


PACK = 8              # samples packed per 128-lane row
F_PAD = 128 // PACK   # per-sample feature slot width (16 lanes)


def _round_up(x, m):
    return (x + m - 1) // m * m


def soft_q_kernel(x_ref, w1_ref, b1_ref, w2_ref, b2_ref, w3_ref, b3_ref, o_ref):
    wdt = w1_ref.dtype
    # Layer 1: block-diagonal W1 == fused concat + linear1 for 8 samples/row.
    # fp32 MXU accumulation; in-kernel cast of the fp32 activations to the
    # weight dtype (no-op for fp32 weights).
    h1 = jnp.dot(x_ref[...].astype(wdt), w1_ref[...],
                 preferred_element_type=jnp.float32) + b1_ref[...]
    h1 = jnp.maximum(h1, 0.0)

    # Layer 2 + ReLU (block-diagonal W2, K=N=256 -> full MXU width on v6e/v7x).
    h2 = jnp.dot(h1.astype(wdt), w2_ref[...],
                 preferred_element_type=jnp.float32) + b2_ref[...]
    h2 = jnp.maximum(h2, 0.0)

    # Layer 3: block-diagonal (PACK*L, PACK) -> one q per packed sample.
    # b3 comes in as an SMEM scalar.
    q = jnp.dot(h2.astype(wdt), w3_ref[...],
                preferred_element_type=jnp.float32) + b3_ref[0, 0]
    o_ref[...] = q.astype(o_ref.dtype)


def soft_q_forward(state, action, packed, *, block_rows=1024):
    """Pallas implementation of SoftQNetwork.forward(state, action) -> (B, 1).

    `packed` is the output of pack_params() (block-diagonal weights)."""
    B, sdim = state.shape
    adim = action.shape[1]
    f_in = sdim + adim
    assert f_in <= F_PAD, (
        "TODO(synk): fall back to an unpacked path when state_dim+action_dim > 16")

    r_need = pl.cdiv(B, PACK)                 # packed rows needed
    if r_need <= 32:                          # <= 256 samples: single tile
        tr, num_blocks = r_need, 1
    else:
        # at least 2 blocks so both v7x TensorCores get work; cap tile for VMEM.
        tr = min(block_rows, _round_up(pl.cdiv(r_need, 2), 8))
        num_blocks = pl.cdiv(r_need, tr)
    r_pad = num_blocks * tr
    b_pad = r_pad * PACK

    # Fused concat + lane packing: 8 samples per 128-lane row, each sample in a
    # zero-padded 16-lane slot.  Activations stay fp32 in HBM; any bf16 cast
    # happens inside the kernel.
    x = jnp.concatenate([state.astype(jnp.float32),
                         action.astype(jnp.float32)], axis=1)     # (B, f_in)
    x = jnp.pad(x, ((0, b_pad - B), (0, F_PAD - f_in)))           # (b_pad, 16)
    x = x.reshape(r_pad, PACK * F_PAD)                            # (r_pad, 128)

    batch_map = lambda i: (i, 0)
    const_map = lambda i: (0, 0)   # same block every step -> stays VMEM-resident

    out = pl.pallas_call(
        soft_q_kernel,
        out_shape=jax.ShapeDtypeStruct((r_pad, PACK), jnp.float32),
        grid_spec=pltpu.PrefetchScalarGridSpec(
            num_scalar_prefetch=0,
            grid=(num_blocks,),
            in_specs=[
                pl.BlockSpec((tr, PACK * F_PAD), batch_map),        # packed acts
                pl.BlockSpec(packed["w1_blk"].shape, const_map),    # (128, 8L)
                pl.BlockSpec(packed["b1_blk"].shape, const_map),    # (1, 8L)
                pl.BlockSpec(packed["w2_blk"].shape, const_map),    # (8L, 8L)
                pl.BlockSpec(packed["b2_blk"].shape, const_map),    # (1, 8L)
                pl.BlockSpec(packed["w3_blk"].shape, const_map),    # (8L, 8)
                pl.BlockSpec(memory_space=pltpu.MemorySpace.SMEM),  # b3 scalar
            ],
            out_specs=pl.BlockSpec((tr, PACK), batch_map),
        ),
        compiler_params=pltpu.CompilerParams(
            # Independent batch tiles -> sharded across TensorCores on v7x.
            dimension_semantics=("parallel",),
        ),
    )(x, packed["w1_blk"], packed["b1_blk"], packed["w2_blk"],
      packed["b2_blk"], packed["w3_blk"], packed["b3"])

    # (r_pad, 8) row-major == sample order; lane-pack order matches.
    return out.reshape(b_pad, 1)[:B]


def init_params(key, state_dim, action_dim, layer_dim, init_w=0.003,
                weight_dtype=jnp.float32):
    """nn.Linear-style init mirroring the PyTorch module (canonical layout:
    weights are (in, out), w3 is a (1, layer_dim) row, biases fp32)."""
    in1 = state_dim + action_dim
    k1, k2, k3, k4, k5, k6 = jax.random.split(key, 6)
    bound1 = 1.0 / float(in1) ** 0.5
    bound2 = 1.0 / float(layer_dim) ** 0.5
    return {
        "w1": jax.random.uniform(k1, (in1, layer_dim), jnp.float32,
                                 -bound1, bound1).astype(weight_dtype),
        "b1": jax.random.uniform(k2, (1, layer_dim), jnp.float32, -bound1, bound1),
        "w2": jax.random.uniform(k3, (layer_dim, layer_dim), jnp.float32,
                                 -bound2, bound2).astype(weight_dtype),
        "b2": jax.random.uniform(k4, (1, layer_dim), jnp.float32, -bound2, bound2),
        "w3": jax.random.uniform(k5, (1, layer_dim), jnp.float32,
                                 -init_w, init_w).astype(weight_dtype),
        "b3": jax.random.uniform(k6, (1, 1), jnp.float32, -init_w, init_w),
    }


def pack_params(params, state_dim, action_dim):
    """Materialize (once) the block-diagonal / tiled weights for the
    lane-packed kernel.  Keeps the weight dtype; biases stay fp32."""
    f_in = state_dim + action_dim
    assert f_in <= F_PAD, (
        "TODO(synk): fall back to an unpacked path when state_dim+action_dim > 16")
    L = params["w2"].shape[0]
    wdt = params["w2"].dtype
    eye = jnp.eye(PACK, dtype=jnp.float32)

    w1 = jnp.pad(params["w1"].astype(jnp.float32),
                 ((0, F_PAD - f_in), (0, 0)))                    # (16, L), zero pad rows
    w1_blk = jnp.kron(eye, w1).astype(wdt)                       # (128, 8L)
    w2_blk = jnp.kron(eye, params["w2"].astype(jnp.float32)).astype(wdt)  # (8L, 8L)
    w3_col = params["w3"].astype(jnp.float32).reshape(L, 1)
    w3_blk = jnp.kron(eye, w3_col).astype(wdt)                   # (8L, 8)
    return {
        "w1_blk": w1_blk,
        "b1_blk": jnp.tile(params["b1"].astype(jnp.float32), (1, PACK)),
        "w2_blk": w2_blk,
        "b2_blk": jnp.tile(params["b2"].astype(jnp.float32), (1, PACK)),
        "w3_blk": w3_blk,
        "b3": params["b3"].astype(jnp.float32),
    }


def reference_forward(state, action, params):
    """Plain-JAX fp32 reference (same math as the PyTorch module)."""
    x = jnp.concatenate([state, action], axis=1)
    h1 = jnp.maximum(x @ params["w1"].astype(jnp.float32) + params["b1"], 0.0)
    h2 = jnp.maximum(h1 @ params["w2"].astype(jnp.float32) + params["b2"], 0.0)
    return h2 @ params["w3"].astype(jnp.float32).T + params["b3"]


if __name__ == "__main__":
    state_dim, action_dim, layer_dim = 8, 4, 32
    key = jax.random.PRNGKey(0)
    kp, ks, ka, ks2, ka2 = jax.random.split(key, 5)

    params = init_params(kp, state_dim, action_dim, layer_dim)
    packed = pack_params(params, state_dim, action_dim)

    # --- small batch, fp32 (matches the PyTorch fp32 forward) ---
    batch = 2
    state = jax.random.normal(ks, (batch, state_dim), jnp.float32)
    action = jax.random.normal(ka, (batch, action_dim), jnp.float32)
    q = jax.block_until_ready(soft_q_forward(state, action, packed))
    ref = reference_forward(state, action, params)
    assert q.shape == (batch, 1)
    assert jnp.allclose(q, ref, atol=1e-5, rtol=1e-5), "fp32 small-batch mismatch"

    # --- larger ragged batch, fp32 (multi-block grid, megacore split,
    #     padded/sliced tail rows) ---
    big = 1030
    state_b = jax.random.normal(ks2, (big, state_dim), jnp.float32)
    action_b = jax.random.normal(ka2, (big, action_dim), jnp.float32)
    q_b = jax.block_until_ready(soft_q_forward(state_b, action_b, packed))
    ref_b = reference_forward(state_b, action_b, params)
    assert q_b.shape == (big, 1)
    assert jnp.allclose(q_b, ref_b, atol=1e-4, rtol=1e-4), "fp32 big-batch mismatch"

    # --- bf16 weights, fp32 activations in HBM, in-kernel cast (v6e/v7x path;
    #     on v5e simply keep fp32 weights) ---
    params_bf16 = {k: (v.astype(jnp.bfloat16) if k.startswith("w") else v)
                   for k, v in params.items()}
    packed_bf16 = pack_params(params_bf16, state_dim, action_dim)
    q_bf16 = jax.block_until_ready(soft_q_forward(state_b, action_b, packed_bf16))
    assert q_bf16.shape == (big, 1)
    assert jnp.allclose(q_bf16.astype(jnp.float32), ref_b,
                        atol=2e-2, rtol=2e-2), "bf16 mismatch"

    print("KERNEL_OK")
</pallas_src>

<mosaic_0001>
module attributes {stable_mosaic.version = 11 : i64} {
  func.func @soft_q_kernel(%arg0: i32, %arg1: memref<1x128xf32, #tpu.memory_space<vmem>>, %arg2: memref<128x256xf32, #tpu.memory_space<vmem>>, %arg3: memref<1x256xf32, #tpu.memory_space<vmem>>, %arg4: memref<256x256xf32, #tpu.memory_space<vmem>>, %arg5: memref<1x256xf32, #tpu.memory_space<vmem>>, %arg6: memref<256x8xf32, #tpu.memory_space<vmem>>, %arg7: memref<1x1xf32, #tpu.memory_space<smem>>, %arg8: memref<1x8xf32, #tpu.memory_space<vmem>>) attributes {dimension_semantics = [#tpu.dimension_semantics<parallel>], iteration_bounds = array<i64: 1>, scalar_prefetch = 0 : i64, scratch_operands = 0 : i64, tpu.core_type = #tpu.core_type<tc>, window_params = [{transform_indices = @transform_0, window_bounds = array<i64: 1, 128>}, {pipeline_mode = #tpu.pipeline_mode<synchronous>, transform_indices = @transform_1, window_bounds = array<i64: 128, 256>}, {pipeline_mode = #tpu.pipeline_mode<synchronous>, transform_indices = @transform_2, window_bounds = array<i64: 1, 256>}, {pipeline_mode = #tpu.pipeline_mode<synchronous>, transform_indices = @transform_3, window_bounds = array<i64: 256, 256>}, {pipeline_mode = #tpu.pipeline_mode<synchronous>, transform_indices = @transform_4, window_bounds = array<i64: 1, 256>}, {pipeline_mode = #tpu.pipeline_mode<synchronous>, transform_indices = @transform_5, window_bounds = array<i64: 256, 8>}, {transform_indices = @transform_6, window_bounds = array<i64: 1, 1>}, {transform_indices = @transform_7, window_bounds = array<i64: 1, 8>}]} {
    %c0 = arith.constant 0 : index
    %c0_0 = arith.constant 0 : index
    %0 = vector.load %arg1[%c0, %c0_0] : memref<1x128xf32, #tpu.memory_space<vmem>>, vector<1x128xf32>
    %c0_1 = arith.constant 0 : index
    %c0_2 = arith.constant 0 : index
    %1 = vector.load %arg2[%c0_1, %c0_2] : memref<128x256xf32, #tpu.memory_space<vmem>>, vector<128x256xf32>
    %cst = arith.constant dense<0.000000e+00> : vector<1x256xf32>
    %2 = tpu.matmul %0, %1, %cst {dimension_numbers = #tpu.dot_dimension_numbers<[1], [0], [0], [1], [0, 0, 1, 1], [], []>} : vector<1x128xf32>, vector<128x256xf32>, vector<1x256xf32> -> vector<1x256xf32>
    %c0_3 = arith.constant 0 : index
    %c0_4 = arith.constant 0 : index
    %3 = vector.load %arg3[%c0_3, %c0_4] : memref<1x256xf32, #tpu.memory_space<vmem>>, vector<1x256xf32>
    %4 = arith.addf %2, %3 : vector<1x256xf32>
    %cst_5 = arith.constant 0.000000e+00 : f32
    %5 = vector.broadcast %cst_5 : f32 to vector<1x256xf32>
    %6 = arith.maximumf %4, %5 : vector<1x256xf32>
    %c0_6 = arith.constant 0 : index
    %c0_7 = arith.constant 0 : index
    %7 = vector.load %arg4[%c0_6, %c0_7] : memref<256x256xf32, #tpu.memory_space<vmem>>, vector<256x256xf32>
    %cst_8 = arith.constant dense<0.000000e+00> : vector<1x256xf32>
    %8 = tpu.matmul %6, %7, %cst_8 {dimension_numbers = #tpu.dot_dimension_numbers<[1], [0], [0], [1], [0, 0, 1, 1], [], []>} : vector<1x256xf32>, vector<256x256xf32>, vector<1x256xf32> -> vector<1x256xf32>
    %c0_9 = arith.constant 0 : index
    %c0_10 = arith.constant 0 : index
    %9 = vector.load %arg5[%c0_9, %c0_10] : memref<1x256xf32, #tpu.memory_space<vmem>>, vector<1x256xf32>
    %10 = arith.addf %8, %9 : vector<1x256xf32>
    %cst_11 = arith.constant 0.000000e+00 : f32
    %11 = vector.broadcast %cst_11 : f32 to vector<1x256xf32>
    %12 = arith.maximumf %10, %11 : vector<1x256xf32>
    %c0_12 = arith.constant 0 : index
    %c0_13 = arith.constant 0 : index
    %13 = vector.load %arg6[%c0_12, %c0_13] : memref<256x8xf32, #tpu.memory_space<vmem>>, vector<256x8xf32>
    %cst_14 = arith.constant dense<0.000000e+00> : vector<1x8xf32>
    %14 = tpu.matmul %12, %13, %cst_14 {dimension_numbers = #tpu.dot_dimension_numbers<[1], [0], [0], [1], [0, 0, 1, 1], [], []>} : vector<1x256xf32>, vector<256x8xf32>, vector<1x8xf32> -> vector<1x8xf32>
    %c0_15 = arith.constant 0 : index
    %c0_16 = arith.constant 0 : index
    %15 = memref.load %arg7[%c0_15, %c0_16] : memref<1x1xf32, #tpu.memory_space<smem>>
    %16 = vector.broadcast %15 : f32 to vector<1x8xf32>
    %17 = arith.addf %14, %16 : vector<1x8xf32>
    %c0_17 = arith.constant 0 : index
    %c0_18 = arith.constant 0 : index
    %18 = vector.load %arg8[%c0_17, %c0_18] : memref<1x8xf32, #tpu.memory_space<vmem>>, vector<1x8xf32>
    tpu.vector_store %arg8[%c0_17, %c0_18], %17 {strides = array<i32>} : memref<1x8xf32, #tpu.memory_space<vmem>>, vector<1x8xf32>,
    return
  }
  func.func @transform_0(%arg0: i32) -> (i32, i32) {
    %c0_i32 = arith.constant 0 : i32
    %c0_i32_0 = arith.constant 0 : i32
    return %arg0, %c0_i32 : i32, i32
  }
  func.func @transform_1(%arg0: i32) -> (i32, i32) {
    %c0_i32 = arith.constant 0 : i32
    %c0_i32_0 = arith.constant 0 : i32
    %c0_i32_1 = arith.constant 0 : i32
    return %c0_i32, %c0_i32_0 : i32, i32
  }
  func.func @transform_2(%arg0: i32) -> (i32, i32) {
    %c0_i32 = arith.constant 0 : i32
    %c0_i32_0 = arith.constant 0 : i32
    %c0_i32_1 = arith.constant 0 : i32
    return %c0_i32, %c0_i32_0 : i32, i32
  }
  func.func @transform_3(%arg0: i32) -> (i32, i32) {
    %c0_i32 = arith.constant 0 : i32
    %c0_i32_0 = arith.constant 0 : i32
    %c0_i32_1 = arith.constant 0 : i32
    return %c0_i32, %c0_i32_0 : i32, i32
  }
  func.func @transform_4(%arg0: i32) -> (i32, i32) {
    %c0_i32 = arith.constant 0 : i32
    %c0_i32_0 = arith.constant 0 : i32
    %c0_i32_1 = arith.constant 0 : i32
    return %c0_i32, %c0_i32_0 : i32, i32
  }
  func.func @transform_5(%arg0: i32) -> (i32, i32) {
    %c0_i32 = arith.constant 0 : i32
    %c0_i32_0 = arith.constant 0 : i32
    %c0_i32_1 = arith.constant 0 : i32
    return %c0_i32, %c0_i32_0 : i32, i32
  }
  func.func @transform_6(%arg0: i32) -> (i32, i32) {
    %c0_i32 = arith.constant 0 : i32
    %c0_i32_0 = arith.constant 0 : i32
    %c0_i32_1 = arith.constant 0 : i32
    return %c0_i32, %c0_i32_0 : i32, i32
  }
  func.func @transform_7(%arg0: i32) -> (i32, i32) {
    %c0_i32 = arith.constant 0 : i32
    %c0_i32_0 = arith.constant 0 : i32
    return %arg0, %c0_i32 : i32, i32
  }
}

</mosaic_0001>

<bundles_post_ra>
// kernel: tpu_custom_call.1
= control target key start
LH: loop header
LB: loop body
LE: loop exit
PB: predicated region body
PF: predicated region fallthrough
CT: control target
= control target key end

     0   :  { %13 = vsyncpa [#allocation4], 0  ;;  %s919_s0 = inlined_call_operand.vmem [shape: f32[1,128], index: 0, kind: input, shape index: {}]   ;;  %s920_s1 = inlined_call_operand.vmem [shape: f32[128,256], index: 1, kind: input, shape index: {}]   ;;  %s921_s2 = inlined_call_operand.vmem [shape: f32[1,256], index: 2, kind: input, shape index: {}]   ;;  %s922_s3 = inlined_call_operand.hbm [shape: f32[256,256], index: 3, kind: input, shape index: {}]   ;;  %s923_s4 = inlined_call_operand.vmem [shape: f32[1,256], index: 4, kind: input, shape index: {}]   ;;  %s924_s5 = inlined_call_operand.vmem [shape: f32[256,8], index: 5, kind: input, shape index: {}]   ;;  %s925_s6 = inlined_call_operand.<no memory space> [shape: f32[1,1], index: 6, kind: input, shape index: {}]   ;;  %s926_s7 = inlined_call_operand.hbm [shape: f32[1,8], index: 7, kind: output, shape index: {}]  }
   0x1   :  { %14 = vsyncpa [#allocation5], 0  ;;  %s646_s24 = smov [#allocation3]   ;;  %s598_s28 = scalar_lea.hbm %s922_s3, 8192 }
   0x2   :  { %s26_s25 = sshll.u32 %s646_s24, 4  ;;  %p599_p0 = scmp.ne.s32.totalorder %s922_s3, %s598_s28  ;;  %s27_s25 = int_to_ptr.vmem [resolvable:$true] %s26_s25 }
   0x3   :  { %p602_p1 = scmp.lt.u32.totalorder %s598_s28, %s922_s3 }
   0x5   :  { %p604_p2 = pnand %p602_p1, %p599_p0 }
   0x7   :  { %607 = shalt.err (!%p604_p2)
}
   0x8   :  { %s608_s10 = scalar_lea.vmem %s27_s25, 8192  ;;  %p613_p4 = scmp.lt.s32.totalorder %s27_s25, %s27_s25 }
   0x9   :  { %p609_p3 = scmp.ne.s32.totalorder %s27_s25, %s608_s10  ;;  %p614_p5 = scmp.lt.s32.totalorder %s608_s10, %s608_s10 }
   0xb   :  { %p615_p6 = por %p614_p5, %p613_p4 }
   0xd   :  { %p616_p7 = pnand %p615_p6, %p609_p3 }
   0xf   :  { %619 = shalt.err (!%p616_p7)
}
  0x10   :  { %s647_s11 = smov 256   ;;  %s648_s12 = smov 16  }
  0x11   :  { %32 = dma.hbm_to_vmem [thread:$0]  %s922_s3, 8192, %s27_s25, [#allocation4], %s647_s11, %s647_s11, %s648_s12  }
  0x12   :  { %642 = dma.done.wait [#allocation4], 8192  }
  0x13   :  { %643 = vsyncadd [#allocation4], 4294959104  ;;  %v649_v0 = vmov 0.0   ;;  %v44_v1 = vld [vmem:[%s920_s1 + $0x8] sm:$0xff]  ;;  %v46_v2 = vld [vmem:[%s920_s1 + $0x18] sm:$0xff]  ;;  %s650_s3 = smov [#allocation6]  }
  0x14   :  { %151 = vmatprep.mubr.f32.mxu0 %v649_v0  ;;  %v43_v3 = vld [vmem:[%s920_s1] sm:$0xff]  ;;  %v465_v4 = vpack.c.bf16 %v46_v2, %v44_v1  ;;  %v45_v5 = vld [vmem:[%s920_s1 + $0x10] sm:$0xff]  ;;  %v48_v6 = vld [vmem:[%s920_s1 + $0x28] sm:$0xff]  ;;  %s421_s23 = sshll.u32 %s650_s3, 4  ;;  %vm413_vm0 = vcmask 57344   ;;  %s422_s23 = int_to_ptr.vmem [resolvable:$true] %s421_s23 }
  0x15   :  { %v50_v7 = vld [vmem:[%s920_s1 + $0x38] sm:$0xff]  ;;  %v467_v8 = vpack.c.bf16 %v45_v5, %v43_v3  ;;  %v47_v10 = vld [vmem:[%s920_s1 + $0x20] sm:$0xff]  ;;  %v49_v11 = vld [vmem:[%s920_s1 + $0x30] sm:$0xff]  ;;  %s624_s24 = scalar_lea.vmem %s422_s23, 32  ;;  %p625_p9 = scmp.lt.s32.totalorder %s422_s23, %s422_s23 }
  0x16   :  { %v469_v9 = vpack.c.bf16 %v50_v7, %v48_v6  ;;  %v52_v12 = vld [vmem:[%s920_s1 + $0x48] sm:$0xff]  ;;  %466 = vmatprep.subr.bf16.mxu0 %v465_v4  ;;  %v54_v13 = vld [vmem:[%s920_s1 + $0x58] sm:$0xff]  ;;  %v471_v14 = vpack.c.bf16 %v49_v11, %v47_v10  ;;  %v51_v16 = vld [vmem:[%s920_s1 + $0x40] sm:$0xff] }
  0x17   :  { %468 = vmatpush1.bf16.msra.mxu0 %v467_v8  ;;  %v473_v15 = vpack.c.bf16 %v54_v13, %v52_v12  ;;  %v53_v17 = vld [vmem:[%s920_s1 + $0x50] sm:$0xff]  ;;  %v56_v18 = vld [vmem:[%s920_s1 + $0x68] sm:$0xff]  ;;  %v58_v19 = vld [vmem:[%s920_s1 + $0x78] sm:$0xff] }
  0x18   :  { %470 = vmatprep.subr.bf16.mxu0 %v469_v9  ;;  %v475_v20 = vpack.c.bf16 %v53_v17, %v51_v16  ;;  %v477_v21 = vpack.c.bf16 %v58_v19, %v56_v18  ;;  %v55_v22 = vld [vmem:[%s920_s1 + $0x60] sm:$0xff]  ;;  %v57_v23 = vld [vmem:[%s920_s1 + $0x70] sm:$0xff]  ;;  %v60_v24 = vld [vmem:[%s920_s1 + $0x88] sm:$0xff] }
  0x19   :  { %v62_v25 = vld [vmem:[%s920_s1 + $0x98] sm:$0xff]  ;;  %v59_v26 = vld [vmem:[%s920_s1 + $0x80] sm:$0xff]  ;;  %v61_v27 = vld [vmem:[%s920_s1 + $0x90] sm:$0xff]  ;;  %v479_v31 = vpack.c.bf16 %v57_v23, %v55_v22 }
  0x1a   :  { %v161_v28 = vld [vmem:[#allocation3 + $0x8] sm:$0xff]  ;;  %v163_v29 = vld [vmem:[#allocation3 + $0x18] sm:$0xff]  ;;  %v160_v30 = vld [vmem:[#allocation3] sm:$0xff]  ;;  %v481_v36 = vpack.c.bf16 %v62_v25, %v60_v24  ;;  %v483_v46 = vpack.c.bf16 %v61_v27, %v59_v26 }
  0x1b   :  { %472 = vmatpush1.bf16.msra.mxu0 %v471_v14  ;;  %v497_v32 = vpack.c.bf16 %v163_v29, %v161_v28  ;;  %v162_v33 = vld [vmem:[#allocation3 + $0x10] sm:$0xff]  ;;  %v165_v34 = vld [vmem:[#allocation3 + $0x28] sm:$0xff]  ;;  %v167_v35 = vld [vmem:[#allocation3 + $0x38] sm:$0xff] }
  0x1c   :  { %474 = vmatprep.subr.bf16.mxu0 %v473_v15  ;;  %v499_v37 = vpack.c.bf16 %v162_v33, %v160_v30  ;;  %v501_v38 = vpack.c.bf16 %v167_v35, %v165_v34  ;;  %v164_v39 = vld [vmem:[#allocation3 + $0x20] sm:$0xff]  ;;  %v166_v40 = vld [vmem:[#allocation3 + $0x30] sm:$0xff]  ;;  %v169_v41 = vld [vmem:[#allocation3 + $0x48] sm:$0xff] }
  0x1d   :  { %v64_v42 = vld [vmem:[%s920_s1 + $0xa8] sm:$0xff]  ;;  %v66_v43 = vld [vmem:[%s920_s1 + $0xb8] sm:$0xff]  ;;  %498 = vmatprep.subr.bf16.mxu1 %v497_v32  ;;  %v503_v45 = vpack.c.bf16 %v166_v40, %v164_v39  ;;  %v63_v47 = vld [vmem:[%s920_s1 + $0xa0] sm:$0xff] }
  0x1e   :  { %v171_v44 = vld [vmem:[#allocation3 + $0x58] sm:$0xff]  ;;  %500 = vmatpush1.bf16.msra.mxu1 %v499_v37  ;;  %v168_v49 = vld [vmem:[#allocation3 + $0x40] sm:$0xff]  ;;  %v170_v50 = vld [vmem:[#allocation3 + $0x50] sm:$0xff]  ;;  %v485_v51 = vpack.c.bf16 %v66_v43, %v64_v42 }
  0x1f   :  { %476 = vmatpush1.bf16.msra.mxu0 %v475_v20  ;;  %502 = vmatprep.subr.bf16.mxu1 %v501_v38  ;;  %v505_v48 = vpack.c.bf16 %v171_v44, %v169_v41  ;;  %v65_v52 = vld [vmem:[%s920_s1 + $0xb0] sm:$0xff]  ;;  %v173_v53 = vld [vmem:[#allocation3 + $0x68] sm:$0xff]  ;;  %v175_v54 = vld [vmem:[#allocation3 + $0x78] sm:$0xff]  ;;  %v507_v57 = vpack.c.bf16 %v170_v50, %v168_v49 }
  0x20   :  { %478 = vmatprep.subr.bf16.mxu0 %v477_v21  ;;  %v68_v55 = vld [vmem:[%s920_s1 + $0xc8] sm:$0xff]  ;;  %v70_v56 = vld [vmem:[%s920_s1 + $0xd8] sm:$0xff]  ;;  %v487_v58 = vpack.c.bf16 %v65_v52, %v63_v47  ;;  %v67_v59 = vld [vmem:[%s920_s1 + $0xc0] sm:$0xff]  ;;  %v509_v60 = vpack.c.bf16 %v175_v54, %v173_v53 }
  0x21   :  { %v172_v61 = vld [vmem:[#allocation3 + $0x60] sm:$0xff]  ;;  %v174_v62 = vld [vmem:[#allocation3 + $0x70] sm:$0xff]  ;;  %v489_v63 = vpack.c.bf16 %v70_v56, %v68_v55  ;;  %v177_v1 = vld [vmem:[#allocation3 + $0x88] sm:$0xff] }
  0x22   :  { %504 = vmatpush1.bf16.msra.mxu1 %v503_v45  ;;  %v69_v0 = vld [vmem:[%s920_s1 + $0xd0] sm:$0xff]  ;;  %v179_v2 = vld [vmem:[#allocation3 + $0x98] sm:$0xff]  ;;  %v72_v3 = vld [vmem:[%s920_s1 + $0xe8] sm:$0xff]  ;;  %v511_v5 = vpack.c.bf16 %v174_v62, %v172_v61 }
  0x23   :  { %480 = vmatpush1.bf16.msra.mxu0 %v479_v31  ;;  %506 = vmatprep.subr.bf16.mxu1 %v505_v48  ;;  %v74_v4 = vld [vmem:[%s920_s1 + $0xf8] sm:$0xff]  ;;  %v491_v6 = vpack.c.bf16 %v69_v0, %v67_v59  ;;  %v71_v7 = vld [vmem:[%s920_s1 + $0xe0] sm:$0xff]  ;;  %v513_v8 = vpack.c.bf16 %v179_v2, %v177_v1  ;;  %v178_v10 = vld [vmem:[#allocation3 + $0x90] sm:$0xff] }
  0x24   :  { %482 = vmatprep.subr.bf16.mxu0 %v481_v36  ;;  %v176_v9 = vld [vmem:[#allocation3 + $0x80] sm:$0xff]  ;;  %v493_v11 = vpack.c.bf16 %v74_v4, %v72_v3  ;;  %v73_v12 = vld [vmem:[%s920_s1 + $0xf0] sm:$0xff]  ;;  %v181_v13 = vld [vmem:[#allocation3 + $0xa8] sm:$0xff] }
  0x25   :  { %v183_v14 = vld [vmem:[#allocation3 + $0xb8] sm:$0xff]  ;;  %v515_v15 = vpack.c.bf16 %v178_v10, %v176_v9  ;;  %v495_v16 = vpack.c.bf16 %v73_v12, %v71_v7  ;;  %v180_v18 = vld [vmem:[#allocation3 + $0xa0] sm:$0xff]  ;;  %v182_v19 = vld [vmem:[#allocation3 + $0xb0] sm:$0xff] }
  0x26   :  { %508 = vmatpush1.bf16.msra.mxu1 %v507_v57  ;;  %v517_v17 = vpack.c.bf16 %v183_v14, %v181_v13  ;;  %v185_v20 = vld [vmem:[#allocation3 + $0xc8] sm:$0xff]  ;;  %v187_v21 = vld [vmem:[#allocation3 + $0xd8] sm:$0xff]  ;;  %v519_v22 = vpack.c.bf16 %v182_v19, %v180_v18  ;;  %v42_v23 = vld [vmem:[%s919_s0] sm:$0x1] }
  0x27   :  { %484 = vmatpush1.bf16.msra.mxu0 %v483_v46  ;;  %510 = vmatprep.subr.bf16.mxu1 %v509_v60  ;;  %v521_v24 = vpack.c.bf16 %v187_v21, %v185_v20  ;;  %v184_v25 = vld [vmem:[#allocation3 + $0xc0] sm:$0xff]  ;;  %v186_v26 = vld [vmem:[#allocation3 + $0xd0] sm:$0xff]  ;;  %v189_v27 = vld [vmem:[#allocation3 + $0xe8] sm:$0xff] }
  0x28   :  { %486 = vmatprep.subr.bf16.mxu0 %v485_v51  ;;  %v191_v28 = vld [vmem:[#allocation3 + $0xf8] sm:$0xff]  ;;  %v523_v29 = vpack.c.bf16 %v186_v26, %v184_v25  ;;  %v188_v31 = vld [vmem:[#allocation3 + $0xe0] sm:$0xff]  ;;  %v190_v32 = vld [vmem:[#allocation3 + $0xf0] sm:$0xff] }
  0x29   :  { %v525_v30 = vpack.c.bf16 %v191_v28, %v189_v27  ;;  %v193_v33 = vld [vmem:[#allocation3 + $0x108] sm:$0xff]  ;;  %v195_v34 = vld [vmem:[#allocation3 + $0x118] sm:$0xff]  ;;  %v527_v35 = vpack.c.bf16 %v190_v32, %v188_v31  ;;  %v192_v37 = vld [vmem:[#allocation3 + $0x100] sm:$0xff] }
  0x2a   :  { %512 = vmatpush1.bf16.msra.mxu1 %v511_v5  ;;  %v529_v36 = vpack.c.bf16 %v195_v34, %v193_v33  ;;  %v194_v38 = vld [vmem:[#allocation3 + $0x110] sm:$0xff]  ;;  %v197_v39 = vld [vmem:[#allocation3 + $0x128] sm:$0xff]  ;;  %v199_v40 = vld [vmem:[#allocation3 + $0x138] sm:$0xff] }
  0x2b   :  { %488 = vmatpush1.bf16.msra.mxu0 %v487_v58  ;;  %514 = vmatprep.subr.bf16.mxu1 %v513_v8  ;;  %v531_v41 = vpack.c.bf16 %v194_v38, %v192_v37  ;;  %v533_v42 = vpack.c.bf16 %v199_v40, %v197_v39  ;;  %v196_v43 = vld [vmem:[#allocation3 + $0x120] sm:$0xff]  ;;  %v198_v44 = vld [vmem:[#allocation3 + $0x130] sm:$0xff]  ;;  %v201_v45 = vld [vmem:[#allocation3 + $0x148] sm:$0xff] }
  0x2c   :  { %490 = vmatprep.subr.bf16.mxu0 %v489_v63  ;;  %v203_v46 = vld [vmem:[#allocation3 + $0x158] sm:$0xff]  ;;  %v535_v47 = vpack.c.bf16 %v198_v44, %v196_v43  ;;  %v200_v49 = vld [vmem:[#allocation3 + $0x140] sm:$0xff]  ;;  %v202_v50 = vld [vmem:[#allocation3 + $0x150] sm:$0xff] }
  0x2d   :  { %v537_v48 = vpack.c.bf16 %v203_v46, %v201_v45  ;;  %v205_v51 = vld [vmem:[#allocation3 + $0x168] sm:$0xff]  ;;  %v207_v52 = vld [vmem:[#allocation3 + $0x178] sm:$0xff]  ;;  %v539_v53 = vpack.c.bf16 %v202_v50, %v200_v49  ;;  %v204_v55 = vld [vmem:[#allocation3 + $0x160] sm:$0xff] }
  0x2e   :  { %516 = vmatpush1.bf16.msra.mxu1 %v515_v15  ;;  %v541_v54 = vpack.c.bf16 %v207_v52, %v205_v51  ;;  %v206_v56 = vld [vmem:[#allocation3 + $0x170] sm:$0xff]  ;;  %v209_v57 = vld [vmem:[#allocation3 + $0x188] sm:$0xff]  ;;  %v211_v58 = vld [vmem:[#allocation3 + $0x198] sm:$0xff] }
  0x2f   :  { %492 = vmatpush1.bf16.msra.mxu0 %v491_v6  ;;  %518 = vmatprep.subr.bf16.mxu1 %v517_v17  ;;  %v543_v59 = vpack.c.bf16 %v206_v56, %v204_v55  ;;  %v545_v60 = vpack.c.bf16 %v211_v58, %v209_v57  ;;  %v208_v61 = vld [vmem:[#allocation3 + $0x180] sm:$0xff]  ;;  %v210_v62 = vld [vmem:[#allocation3 + $0x190] sm:$0xff]  ;;  %v213_v63 = vld [vmem:[#allocation3 + $0x1a8] sm:$0xff]  ;;  %v77_v57 = vlaneseq }
  0x30   :  { %494 = vmatprep.subr.bf16.mxu0 %v493_v11  ;;  %v215_v0 = vld [vmem:[#allocation3 + $0x1b8] sm:$0xff]  ;;  %v547_v1 = vpack.c.bf16 %v210_v62, %v208_v61  ;;  %v212_v3 = vld [vmem:[#allocation3 + $0x1a0] sm:$0xff]  ;;  %v214_v4 = vld [vmem:[#allocation3 + $0x1b0] sm:$0xff] }
  0x31   :  { %v549_v2 = vpack.c.bf16 %v215_v0, %v213_v63  ;;  %v217_v5 = vld [vmem:[#allocation3 + $0x1c8] sm:$0xff]  ;;  %v219_v6 = vld [vmem:[#allocation3 + $0x1d8] sm:$0xff]  ;;  %v551_v7 = vpack.c.bf16 %v214_v4, %v212_v3  ;;  %v216_v9 = vld [vmem:[#allocation3 + $0x1c0] sm:$0xff]  ;;  %v78_v58 = vshrl.u32 %v77_v57, 7 }
  0x32   :  { %520 = vmatpush1.bf16.msra.mxu1 %v519_v22  ;;  %v553_v8 = vpack.c.bf16 %v219_v6, %v217_v5  ;;  %v218_v10 = vld [vmem:[#allocation3 + $0x1d0] sm:$0xff]  ;;  %v221_v12 = vld [vmem:[#allocation3 + $0x1e8] sm:$0xff]  ;;  %v223_v13 = vld [vmem:[#allocation3 + $0x1f8] sm:$0xff] }
  0x33   :  { %496 = vmatpush1.bf16.msra.mxu0 %v495_v16  ;;  %522 = vmatprep.subr.bf16.mxu1 %v521_v24  ;;  %v555_v11 = vpack.c.bf16 %v218_v10, %v216_v9  ;;  %v557_v14 = vpack.c.bf16 %v223_v13, %v221_v12  ;;  %v220_v15 = vld [vmem:[#allocation3 + $0x1e0] sm:$0xff]  ;;  %v222_v16 = vld [vmem:[#allocation3 + $0x1f0] sm:$0xff]  ;;  %v326_v19 = vld [vmem:[%s924_s5 + $0x88] sm:$0xff]  ;;  %v83_v61 = vsub.s32 1, %v78_v58 }
  0x34   :  { %v559_v17 = vpack.c.bf16 %v222_v16, %v220_v15  ;;  %v325_v18 = vld [vmem:[%s924_s5 + $0x80] sm:$0xff]  ;;  %v310_v22 = vld [vmem:[%s924_s5 + $0x8] sm:$0xff]  ;;  %v328_v24 = vld [vmem:[%s924_s5 + $0x98] sm:$0xff] }
  0x35   :  { %v309_v20 = vld [vmem:[%s924_s5] sm:$0xff]  ;;  %v561_v21 = vpack.c.bf16 %v326_v19, %v325_v18  ;;  %v311_v27 = vld [vmem:[%s924_s5 + $0x10] sm:$0xff]  ;;  %v312_v28 = vld [vmem:[%s924_s5 + $0x18] sm:$0xff] }
  0x36   :  { %152 = vmatmul.mubr.f32.vlgmr.msra.gmra.mrb[0].mxu0 %v42_v23  ;;  %524 = vmatpush1.bf16.msra.mxu1 %v523_v29  ;;  %v327_v23 = vld [vmem:[%s924_s5 + $0x90] sm:$0xff]  ;;  %v563_v25 = vpack.c.bf16 %v310_v22, %v309_v20  ;;  %v329_v29 = vld [vmem:[%s924_s5 + $0xa0] sm:$0xff]  ;;  %v567_v31 = vpack.c.bf16 %v312_v28, %v311_v27  ;;  %v314_v34 = vld [vmem:[%s924_s5 + $0x28] sm:$0xff] }
  0x37   :  { %526 = vmatprep.subr.bf16.mxu1 %v525_v30  ;;  %v565_v26 = vpack.c.bf16 %v328_v24, %v327_v23  ;;  %562 = vmatprep.subr.bf16.mxu0 %v561_v21  ;;  %v330_v30 = vld [vmem:[%s924_s5 + $0xa8] sm:$0xff]  ;;  %v313_v33 = vld [vmem:[%s924_s5 + $0x20] sm:$0xff]  ;;  %v315_v39 = vld [vmem:[%s924_s5 + $0x30] sm:$0xff] }
  0x38   :  { %564 = vmatpush3.bf16.msra.mxu0 %v563_v25  ;;  %v569_v32 = vpack.c.bf16 %v330_v30, %v329_v29  ;;  %v571_v37 = vpack.c.bf16 %v314_v34, %v313_v33  ;;  %v316_v40 = vld [vmem:[%s924_s5 + $0x38] sm:$0xff]  ;;  %v317_v45 = vld [vmem:[%s924_s5 + $0x40] sm:$0xff]  ;;  %v318_v46 = vld [vmem:[%s924_s5 + $0x48] sm:$0xff]  ;;  %v342_v25 = vstv %s925_s6 }
  0x39   :  { %566 = vmatprep.subr.bf16.mxu0 %v565_v26  ;;  %v575_v43 = vpack.c.bf16 %v316_v40, %v315_v39  ;;  %v579_v49 = vpack.c.bf16 %v318_v46, %v317_v45  ;;  %v319_v51 = vld [vmem:[%s924_s5 + $0x50] sm:$0xff]  ;;  %v320_v52 = vld [vmem:[%s924_s5 + $0x58] sm:$0xff]  ;;  %v321_v6 = vld [vmem:[%s924_s5 + $0x60] sm:$0xff] }
  0x3a   :  { %528 = vmatpush1.bf16.msra.mxu1 %v527_v35  ;;  %v331_v35 = vld [vmem:[%s924_s5 + $0xb0] sm:$0xff]  ;;  %v583_v55 = vpack.c.bf16 %v320_v52, %v319_v51  ;;  %v340_v10 = vld [vmem:[%s924_s5 + $0xf8] sm:$0xff]  ;;  %v224_v15 = vld [vmem:[%s923_s4] sm:$0x3]  ;;  %s620_s4 = scalar_lea.vmem %s422_s23, 16 }
  0x3b   :  { %530 = vmatprep.subr.bf16.mxu1 %v529_v36  ;;  %v332_v36 = vld [vmem:[%s924_s5 + $0xb8] sm:$0xff]  ;;  %v339_v9 = vld [vmem:[%s924_s5 + $0xf0] sm:$0xff]  ;;  %p621_p8 = scmp.ne.s32.totalorder %s422_s23, %s620_s4  ;;  %p626_p10 = scmp.lt.s32.totalorder %s624_s24, %s620_s4 }
  0x3c   :  { %568 = vmatpush3.bf16.msra.mxu0 %v567_v31  ;;  %v573_v38 = vpack.c.bf16 %v332_v36, %v331_v35  ;;  %v323_v12 = vld [vmem:[%s924_s5 + $0x70] sm:$0xff]  ;;  %v324_v13 = vld [vmem:[%s924_s5 + $0x78] sm:$0xff] }
  0x3d   :  { %570 = vmatprep.subr.bf16.mxu0 %v569_v32  ;;  %p627_p11 = por %p626_p10, %p625_p9 }
  0x3e   :  { %532 = vmatpush1.bf16.msra.mxu1 %v531_v41  ;;  %v333_v41 = vld [vmem:[%s924_s5 + $0xc0] sm:$0xff] }
  0x3f   :  { %534 = vmatprep.subr.bf16.mxu1 %v533_v42  ;;  %v334_v42 = vld [vmem:[%s924_s5 + $0xc8] sm:$0xff]  ;;  %p628_p12 = pnand %p627_p11, %p621_p8 }
  0x40   :  { %572 = vmatpush3.bf16.msra.mxu0 %v571_v37  ;;  %v577_v44 = vpack.c.bf16 %v334_v42, %v333_v41 }
  0x41   :  { %574 = vmatprep.subr.bf16.mxu0 %v573_v38 }
  0x42   :  { %536 = vmatpush1.bf16.msra.mxu1 %v535_v47  ;;  %v335_v47 = vld [vmem:[%s924_s5 + $0xd0] sm:$0xff] }
  0x43   :  { %538 = vmatprep.subr.bf16.mxu1 %v537_v48  ;;  %v336_v48 = vld [vmem:[%s924_s5 + $0xd8] sm:$0xff] }
  0x44   :  { %576 = vmatpush3.bf16.msra.mxu0 %v575_v43  ;;  %v581_v50 = vpack.c.bf16 %v336_v48, %v335_v47 }
  0x45   :  { %578 = vmatprep.subr.bf16.mxu0 %v577_v44 }
  0x46   :  { %540 = vmatpush1.bf16.msra.mxu1 %v539_v53  ;;  %v337_v53 = vld [vmem:[%s924_s5 + $0xe0] sm:$0xff] }
  0x47   :  { %542 = vmatprep.subr.bf16.mxu1 %v541_v54  ;;  %v338_v54 = vld [vmem:[%s924_s5 + $0xe8] sm:$0xff] }
  0x48   :  { %580 = vmatpush3.bf16.msra.mxu0 %v579_v49  ;;  %v585_v56 = vpack.c.bf16 %v338_v54, %v337_v53 }
  0x49   :  { %582 = vmatprep.subr.bf16.mxu0 %v581_v50 }
  0x4a   :  { %544 = vmatpush1.bf16.msra.mxu1 %v543_v59  ;;  %v79_v59 = vsub.s32 0, %v78_v58 }
  0x4b   :  { %546 = vmatprep.subr.bf16.mxu1 %v545_v60  ;;  %v75_v60 = vld [vmem:[%s921_s2] sm:$0x3] }
  0x4c   :  { %584 = vmatpush3.bf16.msra.mxu0 %v583_v55  ;;  %v80_v62 = vrot.slane %v75_v60, %v79_v59  ;;  %v84_v63 = vrot.slane %v75_v60, %v83_v61  ;;  %v229_v16 = vrot.slane %v224_v15, %v79_v59 }
  0x4d   :  { %586 = vmatprep.subr.bf16.mxu0 %v585_v56 }
  0x4e   :  { %548 = vmatpush1.bf16.msra.mxu1 %v547_v1 }
  0x4f   :  { %550 = vmatprep.subr.bf16.mxu1 %v549_v2 }
  0x52   :  { %552 = vmatpush1.bf16.msra.mxu1 %v551_v7  ;;  %v322_v7 = vld [vmem:[%s924_s5 + $0x68] sm:$0xff] }
  0x53   :  { %554 = vmatprep.subr.bf16.mxu1 %v553_v8  ;;  %v587_v8 = vpack.c.bf16 %v322_v7, %v321_v6 }
  0x55   :  { %588 = vmatpush3.bf16.msra.mxu0 %v587_v8 }
  0x56   :  { %556 = vmatpush1.bf16.msra.mxu1 %v555_v11  ;;  %v589_v11 = vpack.c.bf16 %v340_v10, %v339_v9 }
  0x57   :  { %558 = vmatprep.subr.bf16.mxu1 %v557_v14  ;;  %v591_v14 = vpack.c.bf16 %v324_v13, %v323_v12 }
  0x58   :  { %590 = vmatprep.subr.bf16.mxu0 %v589_v11 }
  0x59   :  { %592 = vmatpush3.bf16.msra.mxu0 %v591_v14 }
  0x5a   :  { %560 = vmatpush1.bf16.msra.mxu1 %v559_v17  ;;  %v233_v17 = vrot.slane %v224_v15, %v83_v61 }
 0x109   :  { %v153_v0 = vpop.f32.mrb[0].mxu0 }
 0x10a   :  { %v154_v1 = vadd.f32 %v153_v0, %v80_v62  ;;  %v155_v2 = vpop.f32.mrb[1].mxu0 }
 0x10b   :  { %v156_v3 = vadd.f32 %v155_v2, %v84_v63 }
 0x10c   :  { %v158_v5 = vmax.f32 %v154_v1, 0.0 }
 0x10d   :  { %v159_v4 = vmax.f32 %v156_v3, 0.0 }
 0x10f   :  { %300 = vmatprep.mubr.f32.mxu1 %v159_v4 }
 0x110   :  { %301 = vmatmul.mubr.f32.vlgmr.msra.gmra.mrb[0].mxu1 %v158_v5 }
 0x1e3   :  { %v302_v18 = vpop.f32.mrb[0].mxu1 }
 0x1e4   :  { %v303_v19 = vadd.f32 %v302_v18, %v229_v16  ;;  %v304_v20 = vpop.f32.mrb[1].mxu1 }
 0x1e5   :  { %v305_v21 = vadd.f32 %v304_v20, %v233_v17 }
 0x1e6   :  { %v307_v23 = vmax.f32 %v303_v19, 0.0 }
 0x1e7   :  { %v308_v22 = vmax.f32 %v305_v21, 0.0 }
 0x1e9   :  { %407 = vmatprep.mubr.f32.mxu0 %v308_v22 }
 0x1ea   :  { %408 = vmatmul.mubr.f32.vlgmr.msra.gmra.mrb[2].mxu0 %v307_v23 }
 0x2bd   :  { %v462_v24 = vpop.f32.mrb[2].mxu0 }
 0x2be   :  { %v463_v26 = vpop.f32.mrb[3].mxu0 }
 0x2bf   :  { %v464_v27 = vadd.f32 %v463_v26, %v462_v24 }
 0x2c1   :  { %v410_v28 = vadd.f32 %v464_v27, %v342_v25 }
 0x2c3   :  { %414 = vst.msk [vmem:[#allocation6] sm:$0x1] %vm413_vm0, %v410_v28 }
 0x2c4   :  { %631 = shalt.err (!%p628_p12)
}
 0x2c5   :  { %s632_s6 = scalar_lea.hbm %s926_s7, 16 }
 0x2c6   :  { %p633_p13 = scmp.ne.s32.totalorder %s926_s7, %s632_s6  ;;  %p636_p0 = scmp.lt.u32.totalorder %s632_s6, %s926_s7 }
 0x2c8   :  { %p638_p1 = pnand %p636_p0, %p633_p13 }
 0x2ca   :  { %641 = shalt.err (!%p638_p1)
}
 0x2cb   :  { %424 = dma.vmem_to_hbm [thread:$0]  %s422_s23, 16, %s926_s7, [#allocation5]  }
 0x2cc   :  { %644 = dma.done.wait [#allocation5], 16  }
 0x2cd   :  { %645 = vsyncadd [#allocation5], 4294967280 }
 0x2ce   :  { %428 = vsyncpa [#allocation4], 1 }
 0x2cf   :  { %429 = vsyncpa [#allocation5], 1 }

</bundles_post_ra>
